<compile_context>
chip_gen: v7x
topology: tpu7x:2x2x1
jax: 0.10.0
libtpu: 0.0.40
codegen_flags: <defaults>
</compile_context>

<pallas_src>
import math

import jax
import jax.numpy as jnp
import numpy as np
from jax.experimental import pallas as pl
from jax.experimental.pallas import tpu as pltpu


def _round_up(x, m):
    return ((x + m - 1) // m) * m


def _cdiv(a, b):
    return -(-a // b)


# ----------------------------------------------------------------------------
# ROI-Align as separable interpolation-weight matmuls (MXU-friendly, no gather).
# Matches legacy (aligned=False) ROIAlign used by maskrcnn_benchmark's Pooler.
# TODO(synk): multi-level FPN LevelMapper + per-level scatter not implemented;
#             this setup uses a single scale level (len(scales)==1).
# TODO(synk): adaptive sampling_ratio<=0 path not implemented (fixed ratio only).
# ----------------------------------------------------------------------------
def roi_align_matmul(features, proposals, resolution, spatial_scale, sampling_ratio):
    """features: [N, C, Hf, Wf] f32; proposals: [N, B, 4] xyxy (image coords).

    Returns pooled features [N*B, C, resolution, resolution].
    Bilinear sampling + avg pooling is separable in y/x, so it is expressed as
    two small per-ROI weight matrices contracted with the feature map (MXU work)
    instead of per-sample 4-point gathers.
    """
    N, C, Hf, Wf = features.shape
    res, sr = resolution, sampling_ratio
    hi = jax.lax.Precision.HIGHEST  # keep f32 fidelity of the pooling itself

    def axis_weights(lo, hi_coord, size):
        roi_len = jnp.maximum(hi_coord - lo, 1.0)
        bin_len = roi_len / res
        p = jnp.arange(res, dtype=jnp.float32)
        s = jnp.arange(sr, dtype=jnp.float32)
        c = (lo + p[:, None] * bin_len + (s[None, :] + 0.5) * bin_len / sr).reshape(-1)
        valid = (c >= -1.0) & (c <= size)
        cc = jnp.maximum(c, 0.0)
        low = jnp.minimum(jnp.floor(cc).astype(jnp.int32), size - 1)
        high = jnp.minimum(low + 1, size - 1)
        cc = jnp.where(low >= size - 1, low.astype(jnp.float32), cc)
        l = cc - low.astype(jnp.float32)
        h = 1.0 - l
        idx = jnp.arange(size, dtype=jnp.int32)
        w = (h[:, None] * (idx[None, :] == low[:, None])
             + l[:, None] * (idx[None, :] == high[:, None]))       # [res*sr, size]
        w = jnp.where(valid[:, None], w, 0.0)
        return w.reshape(res, sr, size).mean(axis=1)                # [res, size]

    def per_roi(box):
        x1 = box[0] * spatial_scale
        y1 = box[1] * spatial_scale
        x2 = box[2] * spatial_scale
        y2 = box[3] * spatial_scale
        return axis_weights(y1, y2, Hf), axis_weights(x1, x2, Wf)

    By, Bx = jax.vmap(jax.vmap(per_roi))(proposals)   # [N,B,res,Hf], [N,B,res,Wf]
    tmp = jnp.einsum('nbph,nchw->nbcpw', By, features, precision=hi)
    pooled = jnp.einsum('nbqw,nbcpw->nbcpq', Bx, tmp, precision=hi)
    return pooled.reshape(N * proposals.shape[1], C, res, res)


# Gather-based ROIAlign (original formulation) — kept ONLY as a numeric reference
# for validating the matmul formulation in the demo below.
def roi_align_gather_reference(features, rois, batch_idx, resolution, spatial_scale,
                               sampling_ratio):
    N, C, H, W = features.shape
    res, sr = resolution, sampling_ratio

    def one_roi(box, b):
        feat = features[b]
        x1, y1, x2, y2 = [v * spatial_scale for v in (box[0], box[1], box[2], box[3])]
        roi_w = jnp.maximum(x2 - x1, 1.0)
        roi_h = jnp.maximum(y2 - y1, 1.0)
        bin_h, bin_w = roi_h / res, roi_w / res
        p = jnp.arange(res, dtype=jnp.float32)
        s = jnp.arange(sr, dtype=jnp.float32)
        ys = y1 + p[:, None] * bin_h + (s[None, :] + 0.5) * bin_h / sr
        xs = x1 + p[:, None] * bin_w + (s[None, :] + 0.5) * bin_w / sr
        yy, xx = ys.reshape(-1), xs.reshape(-1)
        P = res * sr
        Y = jnp.broadcast_to(yy[:, None], (P, P)).reshape(-1)
        X = jnp.broadcast_to(xx[None, :], (P, P)).reshape(-1)
        valid = (Y >= -1.0) & (Y <= H) & (X >= -1.0) & (X <= W)
        y = jnp.maximum(Y, 0.0)
        x = jnp.maximum(X, 0.0)
        y_low = jnp.minimum(jnp.floor(y).astype(jnp.int32), H - 1)
        x_low = jnp.minimum(jnp.floor(x).astype(jnp.int32), W - 1)
        y_high = jnp.minimum(y_low + 1, H - 1)
        x_high = jnp.minimum(x_low + 1, W - 1)
        y = jnp.where(y_low >= H - 1, y_low.astype(jnp.float32), y)
        x = jnp.where(x_low >= W - 1, x_low.astype(jnp.float32), x)
        ly, lx = y - y_low, x - x_low
        hy, hx = 1.0 - ly, 1.0 - lx
        v1 = feat[:, y_low, x_low]
        v2 = feat[:, y_low, x_high]
        v3 = feat[:, y_high, x_low]
        v4 = feat[:, y_high, x_high]
        val = hy * hx * v1 + hy * lx * v2 + ly * hx * v3 + ly * lx * v4
        val = jnp.where(valid[None, :], val, 0.0)
        return val.reshape(C, res, sr, res, sr).mean(axis=(2, 4))

    return jax.vmap(one_roi)(rois, batch_idx)


# ----------------------------------------------------------------------------
# Pallas MLP kernels: fc6 -> ReLU -> fc7 -> ReLU.
# ----------------------------------------------------------------------------
def _mlp_resident_kernel(x_ref, w6_ref, b6_ref, w7_ref, b7_ref, o_ref):
    # w6 is VMEM-resident (constant block index) -> read from HBM exactly once.
    h = jnp.dot(x_ref[...], w6_ref[...], preferred_element_type=jnp.float32)
    h = jnp.maximum(h + b6_ref[...], 0.0)                    # bias + ReLU in f32
    y = jnp.dot(h.astype(w7_ref.dtype), w7_ref[...],
                preferred_element_type=jnp.float32)
    o_ref[...] = jnp.maximum(y + b7_ref[...], 0.0)


def _mlp_ktiled_kernel(x_ref, w6_ref, b6_ref, w7_ref, b7_ref, o_ref):
    # fc6 K-tiled; accumulate directly into the (f32, K-resident) output block.
    k = pl.program_id(1)
    part = jnp.dot(x_ref[...], w6_ref[...], preferred_element_type=jnp.float32)

    @pl.when(k == 0)
    def _():
        o_ref[...] = part

    @pl.when(k > 0)
    def _():
        o_ref[...] += part

    @pl.when(k == pl.num_programs(1) - 1)
    def _():
        h = jnp.maximum(o_ref[...] + b6_ref[...], 0.0)
        y = jnp.dot(h.astype(w7_ref.dtype), w7_ref[...],
                    preferred_element_type=jnp.float32)
        o_ref[...] = jnp.maximum(y + b7_ref[...], 0.0)


def _vmem_budget_bytes():
    try:
        cap = getattr(pltpu.get_tpu_info(), "vmem_capacity_bytes", None)
        if cap:
            return int(cap)
    except Exception:
        pass
    return 64 << 20   # conservative: v7x per-TensorCore VMEM


def _choose_mlp_config(R, D_pad, H, cd_item, out_item, budget, tm_cap=512):
    row_align = 16 if cd_item == 2 else 8
    usable = max(budget - (8 << 20), 16 << 20)   # leave headroom for Mosaic scratch

    # Row tile: big LHS for the MXU; >=2 tiles when enough rows so a multi-TC
    # part (v7x) can shard the "parallel" row axis.
    if R <= 256:
        tm = _round_up(max(R, 1), row_align)
    else:
        ntiles = max(2, _cdiv(R, tm_cap))
        tm = min(tm_cap, _round_up(_cdiv(R, ntiles), row_align))

    def resident_need(tm_):
        return (2 * tm_ * D_pad * cd_item        # x tiles (double buffered)
                + D_pad * H * cd_item            # resident w6 (single buffered)
                + H * H * cd_item                # w7
                + 2 * tm_ * H * out_item         # output tiles
                + 4 * H * 4)                     # biases

    while True:
        need = resident_need(tm)
        ok = need <= usable
        if ok or tm <= 128:
            break
        tm = max(row_align, _round_up(tm // 2, row_align))
    if ok:
        return dict(resident=True, tm=tm, tk=D_pad, need=need, usable=usable)

    # K-tiled fallback: tk = largest 128-multiple dividing D_pad, <= 2048
    # (e.g. D=12544 -> tk=1792, 7 K-steps, no padded MACs / padded HBM bytes).
    n128 = D_pad // 128
    tk = 128
    for d in range(n128, 0, -1):
        if n128 % d == 0 and d * 128 <= 2048:
            tk = d * 128
            break
    need = (2 * tm * tk * cd_item + 2 * tk * H * cd_item + H * H * cd_item
            + 2 * tm * H * out_item + 4 * H * 4)
    return dict(resident=False, tm=tm, tk=tk, need=need, usable=usable)


def _build_specs(resident, tm, tk, D_pad, H, single_buffer):
    def const_spec(shape):
        idx = lambda *_: (0,) * len(shape)
        if single_buffer:
            # Constant block index -> second pipeline buffer is pure VMEM waste.
            return pl.BlockSpec(shape, idx, pipeline_mode=pl.Buffered(1))
        return pl.BlockSpec(shape, idx)

    if resident:
        in_specs = [
            pl.BlockSpec((tm, D_pad), lambda i: (i, 0)),   # x rows
            const_spec((D_pad, H)),                        # w6 (VMEM-resident)
            const_spec((1, H)),                            # b6
            const_spec((H, H)),                            # w7
            const_spec((1, H)),                            # b7
        ]
        out_spec = pl.BlockSpec((tm, H), lambda i: (i, 0))
    else:
        in_specs = [
            pl.BlockSpec((tm, tk), lambda i, k: (i, k)),   # x rows / K tile
            pl.BlockSpec((tk, H), lambda i, k: (k, 0)),    # w6 K tile
            const_spec((1, H)),                            # b6
            const_spec((H, H)),                            # w7
            const_spec((1, H)),                            # b7
        ]
        out_spec = pl.BlockSpec((tm, H), lambda i, k: (i, 0))
    return in_specs, out_spec


def prepare_mlp_params(w6, b6, w7, b7, compute_dtype=jnp.bfloat16):
    """Pre-cast / pre-pad weights ONCE (not per forward). w6: [D, H]; w7: [H, H]."""
    D, H = w6.shape
    D_pad = _round_up(D, 128)
    w6_p = w6.astype(compute_dtype)
    if D_pad != D:
        w6_p = jnp.pad(w6_p, ((0, D_pad - D), (0, 0)))
    return dict(
        dim_in=D,
        w6=w6_p,                                          # [D_pad, H] compute dtype
        b6=b6.astype(jnp.float32).reshape(1, H),
        w7=w7.astype(compute_dtype),                      # [H, H]
        b7=b7.astype(jnp.float32).reshape(1, H),
    )


def mlp_forward(x, params, *, tm_cap=512):
    """x: [R, D] -> relu(relu(x @ w6 + b6) @ w7 + b7), [R, H]."""
    w6_p, b6_2d, w7_p, b7_2d = params["w6"], params["b6"], params["w7"], params["b7"]
    D = params["dim_in"]
    D_pad, H = w6_p.shape
    cd = w6_p.dtype
    R = x.shape[0]

    cfg = _choose_mlp_config(R, D_pad, H, jnp.dtype(cd).itemsize, 4,
                             _vmem_budget_bytes(), tm_cap)
    resident, tm, tk = cfg["resident"], cfg["tm"], cfg["tk"]
    R_pad = _round_up(max(R, 1), tm)

    x_p = x.astype(cd)
    if (R_pad, D_pad) != (R, D):
        x_p = jnp.pad(x_p, ((0, R_pad - R), (0, D_pad - D)))

    grid = (R_pad // tm,) if resident else (R_pad // tm, D_pad // tk)
    sem = ("parallel",) if resident else ("parallel", "arbitrary")
    kernel = _mlp_resident_kernel if resident else _mlp_ktiled_kernel
    vmem_limit = int(min(cfg["usable"], max(2 * cfg["need"] + (4 << 20), 32 << 20)))

    def run(single_buffer):
        in_specs, out_spec = _build_specs(resident, tm, tk, D_pad, H, single_buffer)
        out = pl.pallas_call(
            kernel,
            out_shape=jax.ShapeDtypeStruct((R_pad, H), jnp.float32),
            grid_spec=pltpu.PrefetchScalarGridSpec(
                num_scalar_prefetch=0, grid=grid,
                in_specs=in_specs, out_specs=out_spec),
            compiler_params=pltpu.CompilerParams(
                dimension_semantics=sem, vmem_limit_bytes=vmem_limit),
        )(x_p, w6_p, b6_2d, w7_p, b7_2d)
        return jax.block_until_ready(out)

    try:
        out = run(single_buffer=True)          # single-buffer constant blocks
    except Exception:
        out = run(single_buffer=False)         # fallback if pipeline_mode unsupported

    out = out[:R]
    return out if x.dtype == jnp.float32 else out.astype(x.dtype)


# ----------------------------------------------------------------------------
# Parameter init matching make_fc (kaiming_uniform_ with a=1, zero bias).
# ----------------------------------------------------------------------------
def make_fc_params(key, dim_in, hidden_dim):
    bound = math.sqrt(3.0 / dim_in)   # kaiming_uniform_(a=1)
    w = jax.random.uniform(key, (hidden_dim, dim_in), jnp.float32, -bound, bound)
    b = jnp.zeros((hidden_dim,), jnp.float32)
    return w.T, b   # stored as [dim_in, hidden_dim] so kernel computes x @ W + b


class FPN2MLPFeatureExtractor:
    def __init__(self, in_channels, resolution, scales, sampling_ratio,
                 representation_size, key, use_gn=False, compute_dtype=jnp.bfloat16):
        assert not use_gn  # TODO(synk): GroupNorm path (use_gn=True) not implemented.
        assert len(scales) == 1, "synthetic setup uses a single FPN level"
        self.resolution = resolution
        self.scale = float(scales[0])
        self.sampling_ratio = sampling_ratio
        self.compute_dtype = compute_dtype
        input_size = in_channels * resolution ** 2
        k6, k7 = jax.random.split(key)
        self.w6, self.b6 = make_fc_params(k6, input_size, representation_size)
        self.w7, self.b7 = make_fc_params(k7, representation_size, representation_size)
        # Pre-cast / pre-pad once so no per-call pad/cast of the fc6 weight.
        self.mlp_params = prepare_mlp_params(self.w6, self.b6, self.w7, self.b7,
                                             compute_dtype)
        self.out_channels = representation_size

    def __call__(self, features, proposals):
        # features: [N, C, Hf, Wf] (NCHW); proposals: [N, B, 4] xyxy per image
        pooled = roi_align_matmul(features, proposals, self.resolution,
                                  self.scale, self.sampling_ratio)
        x = pooled.reshape(pooled.shape[0], -1)       # x.view(x.size(0), -1)
        return mlp_forward(x, self.mlp_params)


if __name__ == "__main__":
    key = jax.random.PRNGKey(0)
    in_channels = 4
    resolution = 8
    scales = (0.25,)          # single FPN level; feature stride 4
    sampling_ratio = 2
    representation_size = 128
    N = 2
    Hf = Wf = 16
    img_size = int(round(Hf / scales[0]))  # 64

    k_feat, k_c, k_wh, k_params = jax.random.split(key, 4)
    features = jax.random.normal(k_feat, (N, in_channels, Hf, Wf), jnp.float32)

    boxes_per_img = 8
    cxcy = jax.random.uniform(k_c, (N, boxes_per_img, 2), jnp.float32,
                              8.0, img_size - 8.0)
    wh = jax.random.uniform(k_wh, (N, boxes_per_img, 2), jnp.float32, 4.0, 24.0)
    x1y1 = jnp.clip(cxcy - wh / 2.0, 0.0, img_size - 1.0)
    x2y2 = jnp.clip(cxcy + wh / 2.0, 1.0, img_size - 1.0)
    proposals = jnp.concatenate([x1y1, x2y2], axis=-1)  # [N, B, 4]

    extractor = FPN2MLPFeatureExtractor(in_channels, resolution, scales,
                                        sampling_ratio, representation_size,
                                        key=k_params)
    out = jax.block_until_ready(extractor(features, proposals))
    assert out.shape == (N * boxes_per_img, representation_size)

    # Check 1: matmul-form ROI-Align matches the original gather-based ROIAlign.
    rois = proposals.reshape(-1, 4)
    batch_idx = jnp.repeat(jnp.arange(N, dtype=jnp.int32), boxes_per_img)
    pooled_ref = roi_align_gather_reference(features, rois, batch_idx,
                                            resolution, scales[0], sampling_ratio)
    pooled = roi_align_matmul(features, proposals, resolution, scales[0],
                              sampling_ratio)
    np.testing.assert_allclose(np.asarray(pooled), np.asarray(pooled_ref),
                               rtol=1e-4, atol=1e-4)

    # Check 2: Pallas MLP matches a pure-JAX reference with matching bf16 rounding
    # (bf16 inputs, f32 accumulation), since compute_dtype defaults to bfloat16.
    xr = pooled.reshape(pooled.shape[0], -1)
    cd = extractor.compute_dtype
    hi = jax.lax.Precision.HIGHEST
    xr_c = xr.astype(cd).astype(jnp.float32)
    w6_c = extractor.w6.astype(cd).astype(jnp.float32)
    w7_c = extractor.w7.astype(cd).astype(jnp.float32)
    h = jnp.maximum(jnp.dot(xr_c, w6_c, precision=hi) + extractor.b6, 0.0)
    h_c = h.astype(cd).astype(jnp.float32)
    ref = jnp.maximum(jnp.dot(h_c, w7_c, precision=hi) + extractor.b7, 0.0)
    np.testing.assert_allclose(np.asarray(out), np.asarray(ref),
                               rtol=1e-2, atol=1e-2)

    print("KERNEL_OK")
</pallas_src>

<mosaic_0001>
module attributes {stable_mosaic.version = 11 : i64} {
  func.func @_mlp_resident_kernel(%arg0: i32, %arg1: memref<16x256xbf16, #tpu.memory_space<vmem>>, %arg2: memref<256x128xbf16, #tpu.memory_space<vmem>>, %arg3: memref<1x128xf32, #tpu.memory_space<vmem>>, %arg4: memref<128x128xbf16, #tpu.memory_space<vmem>>, %arg5: memref<1x128xf32, #tpu.memory_space<vmem>>, %arg6: memref<16x128xf32, #tpu.memory_space<vmem>>) attributes {dimension_semantics = [#tpu.dimension_semantics<parallel>], iteration_bounds = array<i64: 1>, scalar_prefetch = 0 : i64, scratch_operands = 0 : i64, tpu.core_type = #tpu.core_type<tc>, window_params = [{transform_indices = @transform_0, window_bounds = array<i64: 16, 256>}, {pipeline_mode = #tpu.pipeline_mode<synchronous>, transform_indices = @transform_1, window_bounds = array<i64: 256, 128>}, {pipeline_mode = #tpu.pipeline_mode<synchronous>, transform_indices = @transform_2, window_bounds = array<i64: 1, 128>}, {pipeline_mode = #tpu.pipeline_mode<synchronous>, transform_indices = @transform_3, window_bounds = array<i64: 128, 128>}, {pipeline_mode = #tpu.pipeline_mode<synchronous>, transform_indices = @transform_4, window_bounds = array<i64: 1, 128>}, {transform_indices = @transform_5, window_bounds = array<i64: 16, 128>}]} {
    %c0 = arith.constant 0 : index
    %c0_0 = arith.constant 0 : index
    %0 = vector.load %arg1[%c0, %c0_0] : memref<16x256xbf16, #tpu.memory_space<vmem>>, vector<16x256xbf16>
    %c0_1 = arith.constant 0 : index
    %c0_2 = arith.constant 0 : index
    %1 = vector.load %arg2[%c0_1, %c0_2] : memref<256x128xbf16, #tpu.memory_space<vmem>>, vector<256x128xbf16>
    %cst = arith.constant dense<0.000000e+00> : vector<16x128xf32>
    %2 = tpu.matmul %0, %1, %cst {dimension_numbers = #tpu.dot_dimension_numbers<[1], [0], [0], [1], [0, 0, 1, 1], [], []>} : vector<16x256xbf16>, vector<256x128xbf16>, vector<16x128xf32> -> vector<16x128xf32>
    %c0_3 = arith.constant 0 : index
    %c0_4 = arith.constant 0 : index
    %3 = vector.load %arg3[%c0_3, %c0_4] : memref<1x128xf32, #tpu.memory_space<vmem>>, vector<1x128xf32>
    %4 = vector.broadcast %3 : vector<1x128xf32> to vector<16x128xf32>
    %5 = arith.addf %2, %4 : vector<16x128xf32>
    %cst_5 = arith.constant 0.000000e+00 : f32
    %6 = vector.broadcast %cst_5 : f32 to vector<16x128xf32>
    %7 = arith.maximumf %5, %6 : vector<16x128xf32>
    %8 = arith.truncf %7 : vector<16x128xf32> to vector<16x128xbf16>
    %c0_6 = arith.constant 0 : index
    %c0_7 = arith.constant 0 : index
    %9 = vector.load %arg4[%c0_6, %c0_7] : memref<128x128xbf16, #tpu.memory_space<vmem>>, vector<128x128xbf16>
    %cst_8 = arith.constant dense<0.000000e+00> : vector<16x128xf32>
    %10 = tpu.matmul %8, %9, %cst_8 {dimension_numbers = #tpu.dot_dimension_numbers<[1], [0], [0], [1], [0, 0, 1, 1], [], []>} : vector<16x128xbf16>, vector<128x128xbf16>, vector<16x128xf32> -> vector<16x128xf32>
    %c0_9 = arith.constant 0 : index
    %c0_10 = arith.constant 0 : index
    %11 = vector.load %arg5[%c0_9, %c0_10] : memref<1x128xf32, #tpu.memory_space<vmem>>, vector<1x128xf32>
    %12 = vector.broadcast %11 : vector<1x128xf32> to vector<16x128xf32>
    %13 = arith.addf %10, %12 : vector<16x128xf32>
    %cst_11 = arith.constant 0.000000e+00 : f32
    %14 = vector.broadcast %cst_11 : f32 to vector<16x128xf32>
    %15 = arith.maximumf %13, %14 : vector<16x128xf32>
    %c0_12 = arith.constant 0 : index
    %c0_13 = arith.constant 0 : index
    %16 = vector.load %arg6[%c0_12, %c0_13] : memref<16x128xf32, #tpu.memory_space<vmem>>, vector<16x128xf32>
    tpu.vector_store %arg6[%c0_12, %c0_13], %15 {strides = array<i32>} : memref<16x128xf32, #tpu.memory_space<vmem>>, vector<16x128xf32>,
    return
  }
  func.func @transform_0(%arg0: i32) -> (i32, i32) {
    %c0_i32 = arith.constant 0 : i32
    %c0_i32_0 = arith.constant 0 : i32
    return %arg0, %c0_i32 : i32, i32
  }
  func.func @transform_1(%arg0: i32) -> (i32, i32) {
    %c0_i32 = arith.constant 0 : i32
    %c0_i32_0 = arith.constant 0 : i32
    %c0_i32_1 = arith.constant 0 : i32
    return %c0_i32, %c0_i32_0 : i32, i32
  }
  func.func @transform_2(%arg0: i32) -> (i32, i32) {
    %c0_i32 = arith.constant 0 : i32
    %c0_i32_0 = arith.constant 0 : i32
    %c0_i32_1 = arith.constant 0 : i32
    return %c0_i32, %c0_i32_0 : i32, i32
  }
  func.func @transform_3(%arg0: i32) -> (i32, i32) {
    %c0_i32 = arith.constant 0 : i32
    %c0_i32_0 = arith.constant 0 : i32
    %c0_i32_1 = arith.constant 0 : i32
    return %c0_i32, %c0_i32_0 : i32, i32
  }
  func.func @transform_4(%arg0: i32) -> (i32, i32) {
    %c0_i32 = arith.constant 0 : i32
    %c0_i32_0 = arith.constant 0 : i32
    %c0_i32_1 = arith.constant 0 : i32
    return %c0_i32, %c0_i32_0 : i32, i32
  }
  func.func @transform_5(%arg0: i32) -> (i32, i32) {
    %c0_i32 = arith.constant 0 : i32
    %c0_i32_0 = arith.constant 0 : i32
    return %arg0, %c0_i32 : i32, i32
  }
}

module attributes {stable_mosaic.version = 11 : i64} {
  func.func @_mlp_resident_kernel(%arg0: i32, %arg1: memref<16x256xbf16, #tpu.memory_space<vmem>>, %arg2: memref<256x128xbf16, #tpu.memory_space<vmem>>, %arg3: memref<1x128xf32, #tpu.memory_space<vmem>>, %arg4: memref<128x128xbf16, #tpu.memory_space<vmem>>, %arg5: memref<1x128xf32, #tpu.memory_space<vmem>>, %arg6: memref<16x128xf32, #tpu.memory_space<vmem>>) attributes {dimension_semantics = [#tpu.dimension_semantics<parallel>], iteration_bounds = array<i64: 1>, scalar_prefetch = 0 : i64, scratch_operands = 0 : i64, tpu.core_type = #tpu.core_type<tc>, window_params = [{transform_indices = @transform_0, window_bounds = array<i64: 16, 256>}, {pipeline_mode = #tpu.pipeline_mode<synchronous>, transform_indices = @transform_1, window_bounds = array<i64: 256, 128>}, {pipeline_mode = #tpu.pipeline_mode<synchronous>, transform_indices = @transform_2, window_bounds = array<i64: 1, 128>}, {pipeline_mode = #tpu.pipeline_mode<synchronous>, transform_indices = @transform_3, window_bounds = array<i64: 128, 128>}, {pipeline_mode = #tpu.pipeline_mode<synchronous>, transform_indices = @transform_4, window_bounds = array<i64: 1, 128>}, {transform_indices = @transform_5, window_bounds = array<i64: 16, 128>}]} {
    %c0 = arith.constant 0 : index
    %c0_0 = arith.constant 0 : index
    %0 = vector.load %arg1[%c0, %c0_0] : memref<16x256xbf16, #tpu.memory_space<vmem>>, vector<16x256xbf16>
    %c0_1 = arith.constant 0 : index
    %c0_2 = arith.constant 0 : index
    %1 = vector.load %arg2[%c0_1, %c0_2] : memref<256x128xbf16, #tpu.memory_space<vmem>>, vector<256x128xbf16>
    %cst = arith.constant dense<0.000000e+00> : vector<16x128xf32>
    %2 = tpu.matmul %0, %1, %cst {dimension_numbers = #tpu.dot_dimension_numbers<[1], [0], [0], [1], [0, 0, 1, 1], [], []>} : vector<16x256xbf16>, vector<256x128xbf16>, vector<16x128xf32> -> vector<16x128xf32>
    %c0_3 = arith.constant 0 : index
    %c0_4 = arith.constant 0 : index
    %3 = vector.load %arg3[%c0_3, %c0_4] : memref<1x128xf32, #tpu.memory_space<vmem>>, vector<1x128xf32>
    %4 = vector.broadcast %3 : vector<1x128xf32> to vector<16x128xf32>
    %5 = arith.addf %2, %4 : vector<16x128xf32>
    %cst_5 = arith.constant 0.000000e+00 : f32
    %6 = vector.broadcast %cst_5 : f32 to vector<16x128xf32>
    %7 = arith.maximumf %5, %6 : vector<16x128xf32>
    %8 = arith.truncf %7 : vector<16x128xf32> to vector<16x128xbf16>
    %c0_6 = arith.constant 0 : index
    %c0_7 = arith.constant 0 : index
    %9 = vector.load %arg4[%c0_6, %c0_7] : memref<128x128xbf16, #tpu.memory_space<vmem>>, vector<128x128xbf16>
    %cst_8 = arith.constant dense<0.000000e+00> : vector<16x128xf32>
    %10 = tpu.matmul %8, %9, %cst_8 {dimension_numbers = #tpu.dot_dimension_numbers<[1], [0], [0], [1], [0, 0, 1, 1], [], []>} : vector<16x128xbf16>, vector<128x128xbf16>, vector<16x128xf32> -> vector<16x128xf32>
    %c0_9 = arith.constant 0 : index
    %c0_10 = arith.constant 0 : index
    %11 = vector.load %arg5[%c0_9, %c0_10] : memref<1x128xf32, #tpu.memory_space<vmem>>, vector<1x128xf32>
    %12 = vector.broadcast %11 : vector<1x128xf32> to vector<16x128xf32>
    %13 = arith.addf %10, %12 : vector<16x128xf32>
    %cst_11 = arith.constant 0.000000e+00 : f32
    %14 = vector.broadcast %cst_11 : f32 to vector<16x128xf32>
    %15 = arith.maximumf %13, %14 : vector<16x128xf32>
    %c0_12 = arith.constant 0 : index
    %c0_13 = arith.constant 0 : index
    %16 = vector.load %arg6[%c0_12, %c0_13] : memref<16x128xf32, #tpu.memory_space<vmem>>, vector<16x128xf32>
    tpu.vector_store %arg6[%c0_12, %c0_13], %15 {strides = array<i32>} : memref<16x128xf32, #tpu.memory_space<vmem>>, vector<16x128xf32>,
    return
  }
  func.func @transform_0(%arg0: i32) -> (i32, i32) {
    %c0_i32 = arith.constant 0 : i32
    %c0_i32_0 = arith.constant 0 : i32
    return %arg0, %c0_i32 : i32, i32
  }
  func.func @transform_1(%arg0: i32) -> (i32, i32) {
    %c0_i32 = arith.constant 0 : i32
    %c0_i32_0 = arith.constant 0 : i32
    %c0_i32_1 = arith.constant 0 : i32
    return %c0_i32, %c0_i32_0 : i32, i32
  }
  func.func @transform_2(%arg0: i32) -> (i32, i32) {
    %c0_i32 = arith.constant 0 : i32
    %c0_i32_0 = arith.constant 0 : i32
    %c0_i32_1 = arith.constant 0 : i32
    return %c0_i32, %c0_i32_0 : i32, i32
  }
  func.func @transform_3(%arg0: i32) -> (i32, i32) {
    %c0_i32 = arith.constant 0 : i32
    %c0_i32_0 = arith.constant 0 : i32
    %c0_i32_1 = arith.constant 0 : i32
    return %c0_i32, %c0_i32_0 : i32, i32
  }
  func.func @transform_4(%arg0: i32) -> (i32, i32) {
    %c0_i32 = arith.constant 0 : i32
    %c0_i32_0 = arith.constant 0 : i32
    %c0_i32_1 = arith.constant 0 : i32
    return %c0_i32, %c0_i32_0 : i32, i32
  }
  func.func @transform_5(%arg0: i32) -> (i32, i32) {
    %c0_i32 = arith.constant 0 : i32
    %c0_i32_0 = arith.constant 0 : i32
    return %arg0, %c0_i32 : i32, i32
  }
}

</mosaic_0001>

<bundles_post_ra>
// kernel: tpu_custom_call.1
= control target key start
LH: loop header
LB: loop body
LE: loop exit
PB: predicated region body
PF: predicated region fallthrough
CT: control target
= control target key end

     0   :  { %10 = vsyncpa [#allocation3], 0  ;;  %s704_s0 = inlined_call_operand.hbm [shape: bf16[16,256], index: 0, kind: input, shape index: {}]   ;;  %s705_s1 = inlined_call_operand.hbm [shape: bf16[256,128], index: 1, kind: input, shape index: {}]   ;;  %s706_s2 = inlined_call_operand.vmem [shape: f32[1,128], index: 2, kind: input, shape index: {}]   ;;  %s707_s3 = inlined_call_operand.hbm [shape: bf16[128,128], index: 3, kind: input, shape index: {}]   ;;  %s708_s4 = inlined_call_operand.vmem [shape: f32[1,128], index: 4, kind: input, shape index: {}]   ;;  %s709_s5 = inlined_call_operand.hbm [shape: f32[16,128], index: 5, kind: output, shape index: {}]  }
   0x1   :  { %11 = vsyncpa [#allocation6], 0 }
   0x2   :  { %12 = vsyncpa [#allocation4], 0  ;;  %s598_s18 = smov [#allocation5]   ;;  %s504_s22 = scalar_lea.hbm %s705_s1, 2048 }
   0x3   :  { %s30_s19 = sshll.u32 %s598_s18, 4  ;;  %p505_p0 = scmp.ne.s32.totalorder %s705_s1, %s504_s22  ;;  %s31_s19 = int_to_ptr.vmem [resolvable:$true] %s30_s19 }
   0x4   :  { %p508_p1 = scmp.lt.u32.totalorder %s504_s22, %s705_s1 }
   0x6   :  { %p510_p2 = pnand %p508_p1, %p505_p0 }
   0x8   :  { %513 = shalt.err (!%p510_p2)
}
   0x9   :  { %s514_s27 = scalar_lea.vmem %s31_s19, 2048  ;;  %p519_p4 = scmp.lt.s32.totalorder %s31_s19, %s31_s19 }
   0xa   :  { %p515_p3 = scmp.ne.s32.totalorder %s31_s19, %s514_s27  ;;  %p520_p5 = scmp.lt.s32.totalorder %s514_s27, %s514_s27 }
   0xc   :  { %p521_p6 = por %p520_p5, %p519_p4 }
   0xe   :  { %p522_p7 = pnand %p521_p6, %p515_p3 }
  0x10   :  { %525 = shalt.err (!%p522_p7)
}
  0x11   :  { %s599_s28 = smov 64   ;;  %s600_s29 = smov 4  }
  0x12   :  { %36 = dma.hbm_to_vmem [thread:$0]  %s705_s1, 2048, %s31_s19, [#allocation6], %s599_s28, %s599_s28, %s600_s29  }
  0x13   :  { %s601_s7 = smov [#allocation2]   ;;  %s526_s11 = scalar_lea.hbm %s704_s0, 256 }
  0x14   :  { %s18_s8 = sshll.u32 %s601_s7, 4  ;;  %p527_p8 = scmp.ne.s32.totalorder %s704_s0, %s526_s11  ;;  %s19_s8 = int_to_ptr.vmem [resolvable:$true] %s18_s8 }
  0x15   :  { %p530_p9 = scmp.lt.u32.totalorder %s526_s11, %s704_s0 }
  0x17   :  { %p532_p10 = pnand %p530_p9, %p527_p8 }
  0x19   :  { %535 = shalt.err (!%p532_p10)
}
  0x1a   :  { %s536_s16 = scalar_lea.vmem %s19_s8, 256  ;;  %p541_p12 = scmp.lt.s32.totalorder %s19_s8, %s19_s8 }
  0x1b   :  { %p537_p11 = scmp.ne.s32.totalorder %s19_s8, %s536_s16  ;;  %p542_p13 = scmp.lt.s32.totalorder %s536_s16, %s536_s16 }
  0x1d   :  { %p543_p0 = por %p542_p13, %p541_p12 }
  0x1f   :  { %p544_p1 = pnand %p543_p0, %p537_p11 }
  0x21   :  { %547 = shalt.err (!%p544_p1)
}
  0x22   :  { %s602_s1 = smov 128   ;;  %s603_s17 = smov 8  }
  0x23   :  { %24 = dma.hbm_to_vmem [thread:$0]  %s704_s0, 256, %s19_s8, [#allocation3], %s602_s1, %s602_s1, %s603_s17  }
  0x24   :  { %s604_s20 = smov [#allocation7]   ;;  %s548_s24 = scalar_lea.hbm %s707_s3, 1024 }
  0x25   :  { %s44_s21 = sshll.u32 %s604_s20, 4  ;;  %p549_p2 = scmp.ne.s32.totalorder %s707_s3, %s548_s24  ;;  %s45_s21 = int_to_ptr.vmem [resolvable:$true] %s44_s21 }
  0x26   :  { %p552_p3 = scmp.lt.u32.totalorder %s548_s24, %s707_s3 }
  0x28   :  { %p554_p4 = pnand %p552_p3, %p549_p2 }
  0x2a   :  { %557 = shalt.err (!%p554_p4)
}
  0x2b   :  { %s558_s6 = scalar_lea.vmem %s45_s21, 1024  ;;  %p563_p6 = scmp.lt.s32.totalorder %s45_s21, %s45_s21 }
  0x2c   :  { %p559_p5 = scmp.ne.s32.totalorder %s45_s21, %s558_s6  ;;  %p564_p7 = scmp.lt.s32.totalorder %s558_s6, %s558_s6 }
  0x2e   :  { %p565_p8 = por %p564_p7, %p563_p6 }
  0x30   :  { %p566_p9 = pnand %p565_p8, %p559_p5 }
  0x32   :  { %569 = shalt.err (!%p566_p9)
}
  0x33   :  { %50 = dma.hbm_to_vmem [thread:$0]  %s707_s3, 1024, %s45_s21, [#allocation6], %s599_s28, %s599_s28, %s600_s29  }
  0x34   :  { %592 = dma.done.wait [#allocation3], 256  }
  0x35   :  { %593 = vsyncadd [#allocation3], 4294967040 }
  0x36   :  { %594 = dma.done.wait [#allocation6], 3072  }
  0x37   :  { %595 = vsyncadd [#allocation6], 4294964224  ;;  %v605_v0 = vmov 0.0   ;;  %v477_v1 = vld [vmem:[#allocation5 + $0x40] sm:$0xff]   ;;  %v479_v3 = vld [vmem:[#allocation5 + $0x48] sm:$0xff]   ;;  %vm606_vm0 = vmmov 0  }
  0x38   :  { %447 = vmatprep.subr.bf16.mxu1 %v605_v0  ;;  %v478_v2 = vld [vmem:[#allocation5] sm:$0xff]   ;;  %416 = vmatprep.subr.bf16.mxu0 %v477_v1  ;;  %v480_v4 = vld [vmem:[#allocation5 + $0x8] sm:$0xff]   ;;  %v481_v5 = vld [vmem:[#allocation5 + $0x50] sm:$0xff]  }
  0x39   :  { %417 = vmatpush3.bf16.msra.mxu0 %v478_v2  ;;  %v482_v6 = vld [vmem:[#allocation5 + $0x10] sm:$0xff]   ;;  %v483_v7 = vld [vmem:[#allocation5 + $0x58] sm:$0xff]   ;;  %v485_v9 = vld [vmem:[#allocation5 + $0x60] sm:$0xff]   ;;  %463 = vmatprep.mubr.msk.bf16.mxu1 %vm606_vm0, %v605_v0 }
  0x3a   :  { %418 = vmatprep.subr.bf16.mxu0 %v479_v3  ;;  %v484_v8 = vld [vmem:[#allocation5 + $0x18] sm:$0xff]   ;;  %v486_v10 = vld [vmem:[#allocation5 + $0x20] sm:$0xff]   ;;  %v487_v11 = vld [vmem:[#allocation5 + $0x68] sm:$0xff]  }
  0x3b   :  { %v488_v12 = vld [vmem:[#allocation5 + $0x28] sm:$0xff]   ;;  %v495_v13 = vld [vmem:[#allocation2 + $0x4] ss:$8 sps:$4 sm:$0xff]   ;;  %v496_v14 = vld [vmem:[#allocation7] sm:$0xff]  }
  0x3c   :  { %v489_v15 = vld [vmem:[#allocation5 + $0x70] sm:$0xff]   ;;  %242 = vmatprep.mubr.bf16.mxu0 %v495_v13  ;;  %448 = vmatpush3.bf16.msra.mxu1 %v496_v14  ;;  %v497_v16 = vld [vmem:[#allocation7 + $0x8] sm:$0xff]   ;;  %v491_v18 = vld [vmem:[#allocation5 + $0x78] sm:$0xff]  }
  0x3d   :  { %419 = vmatpush3.bf16.msra.mxu0 %v480_v4  ;;  %449 = vmatprep.subr.bf16.mxu1 %v605_v0  ;;  %v490_v17 = vld [vmem:[#allocation5 + $0x30] sm:$0xff]   ;;  %v492_v20 = vld [vmem:[#allocation5 + $0x38] sm:$0xff]   ;;  %v500_v23 = vld [vmem:[#allocation7 + $0x20] sm:$0xff]  }
  0x3e   :  { %420 = vmatprep.subr.bf16.mxu0 %v481_v5  ;;  %v498_v19 = vld [vmem:[#allocation7 + $0x10] sm:$0xff]   ;;  %v499_v21 = vld [vmem:[#allocation7 + $0x18] sm:$0xff]   ;;  %v501_v24 = vld [vmem:[#allocation7 + $0x28] sm:$0xff]  }
  0x3f   :  { %v493_v22 = vld [vmem:[#allocation2] ss:$8 sps:$4 sm:$0xff]  }
  0x40   :  { %450 = vmatpush3.bf16.msra.mxu1 %v497_v16  ;;  %v502_v25 = vld [vmem:[#allocation7 + $0x30] sm:$0xff]   ;;  %v503_v26 = vld [vmem:[#allocation7 + $0x38] sm:$0xff]  }
  0x41   :  { %421 = vmatpush3.bf16.msra.mxu0 %v482_v6  ;;  %451 = vmatprep.subr.bf16.mxu1 %v605_v0  ;;  %v388_v28 = vld [vmem:[%s706_s2] ss:$0 sm:$0xff]  ;;  %s607_s2 = smov [#allocation8]  }
  0x42   :  { %422 = vmatprep.subr.bf16.mxu0 %v483_v7  ;;  %v407_v39 = vld [vmem:[%s708_s4] ss:$0 sm:$0xff]  ;;  %s375_s9 = sshll.u32 %s607_s2, 4  ;;  %s376_s9 = int_to_ptr.vmem [resolvable:$true] %s375_s9 }
  0x43   :  { %s570_s10 = scalar_lea.vmem %s376_s9, 256  ;;  %p575_p11 = scmp.lt.s32.totalorder %s376_s9, %s376_s9 }
  0x44   :  { %452 = vmatpush3.bf16.msra.mxu1 %v498_v19  ;;  %p571_p10 = scmp.ne.s32.totalorder %s376_s9, %s570_s10  ;;  %p576_p12 = scmp.lt.s32.totalorder %s570_s10, %s570_s10 }
  0x45   :  { %423 = vmatpush3.bf16.msra.mxu0 %v484_v8  ;;  %453 = vmatprep.subr.bf16.mxu1 %v605_v0 }
  0x46   :  { %424 = vmatprep.subr.bf16.mxu0 %v485_v9  ;;  %p577_p13 = por %p576_p12, %p575_p11 }
  0x48   :  { %454 = vmatpush3.bf16.msra.mxu1 %v499_v21  ;;  %p578_p0 = pnand %p577_p13, %p571_p10 }
  0x49   :  { %425 = vmatpush3.bf16.msra.mxu0 %v486_v10  ;;  %455 = vmatprep.subr.bf16.mxu1 %v605_v0 }
  0x4a   :  { %426 = vmatprep.subr.bf16.mxu0 %v487_v11 }
  0x4c   :  { %456 = vmatpush3.bf16.msra.mxu1 %v500_v23 }
  0x4d   :  { %427 = vmatpush3.bf16.msra.mxu0 %v488_v12  ;;  %457 = vmatprep.subr.bf16.mxu1 %v605_v0 }
  0x4e   :  { %428 = vmatprep.subr.bf16.mxu0 %v489_v15 }
  0x50   :  { %458 = vmatpush3.bf16.msra.mxu1 %v501_v24 }
  0x51   :  { %429 = vmatpush3.bf16.msra.mxu0 %v490_v17  ;;  %459 = vmatprep.subr.bf16.mxu1 %v605_v0 }
  0x52   :  { %430 = vmatprep.subr.bf16.mxu0 %v491_v18 }
  0x54   :  { %460 = vmatpush3.bf16.msra.mxu1 %v502_v25 }
  0x55   :  { %431 = vmatpush3.bf16.msra.mxu0 %v492_v20  ;;  %461 = vmatprep.subr.bf16.mxu1 %v605_v0 }
  0x58   :  { %243 = vmatmul.mubr.bf16.vlgmr.msra.gmra.mrb[0].mxu0 %v493_v22  ;;  %462 = vmatpush3.bf16.msra.mxu1 %v503_v26 }
 0x12b   :  { %v432_v27 = vpop.f32.mrb[0].mxu0 }
 0x12c   :  { %v433_v29 = vpop.f32.mrb[1].mxu0 }
 0x12d   :  { %v434_v30 = vadd.f32 %v433_v29, %v432_v27  ;;  %v435_v31 = vpop.f32.mrb[2].mxu0 }
 0x12e   :  { %v436_v32 = vpop.f32.mrb[3].mxu0 }
 0x12f   :  { %v245_v33 = vadd.f32 %v434_v30, %v388_v28  ;;  %v437_v34 = vadd.f32 %v436_v32, %v435_v31 }
 0x131   :  { %v248_v35 = vadd.f32 %v437_v34, %v388_v28  ;;  %v251_v36 = vmax.f32 %v245_v33, 0.0 }
 0x133   :  { %v252_v37 = vmax.f32 %v248_v35, 0.0 }
 0x135   :  { %v253_v38 = vpack.c.bf16 %v252_v37, %v251_v36 }
 0x137   :  { %464 = vmatmul.mubr.bf16.vlgmr.msra.gmra.mrb[0].mxu1 %v253_v38 }
 0x20a   :  { %v359_v40 = vpop.f32.mrb[0].mxu1 }
 0x20b   :  { %v360_v41 = vadd.f32 %v407_v39, %v359_v40  ;;  %v465_v42 = vpop.f32.mrb[1].mxu1 }
 0x20c   :  { %v362_v43 = vpop.f32.mrb[2].mxu1 }
 0x20d   :  { %v366_v44 = vmax.f32 %v360_v41, 0.0  ;;  %v363_v45 = vadd.f32 %v407_v39, %v362_v43  ;;  %v466_v46 = vpop.f32.mrb[3].mxu1 }
 0x20f   :  { %368 = vst [vmem:[#allocation8] sm:$0xff] %v366_v44  ;;  %v367_v47 = vmax.f32 %v363_v45, 0.0 }
 0x211   :  { %369 = vst [vmem:[#allocation8 + $0x8] sm:$0xff] %v367_v47 }
 0x212   :  { %581 = shalt.err (!%p578_p0)
}
 0x213   :  { %s582_s12 = scalar_lea.hbm %s709_s5, 256 }
 0x214   :  { %p583_p1 = scmp.ne.s32.totalorder %s709_s5, %s582_s12  ;;  %p586_p2 = scmp.lt.u32.totalorder %s582_s12, %s709_s5 }
 0x216   :  { %p588_p3 = pnand %p586_p2, %p583_p1 }
 0x218   :  { %591 = shalt.err (!%p588_p3)
}
 0x219   :  { %381 = dma.vmem_to_hbm [thread:$0]  %s376_s9, 256, %s709_s5, [#allocation4], %s602_s1, %s602_s1, %s603_s17  }
 0x21a   :  { %596 = dma.done.wait [#allocation4], 256  }
 0x21b   :  { %597 = vsyncadd [#allocation4], 4294967040 }
 0x21c   :  { %385 = vsyncpa [#allocation3], 1 }
 0x21d   :  { %386 = vsyncpa [#allocation6], 1 }
 0x21e   :  { %387 = vsyncpa [#allocation4], 1 }

// kernel: tpu_custom_call.1
= control target key start
LH: loop header
LB: loop body
LE: loop exit
PB: predicated region body
PF: predicated region fallthrough
CT: control target
= control target key end

     0   :  { %10 = vsyncpa [#allocation3], 0  ;;  %s704_s0 = inlined_call_operand.hbm [shape: bf16[16,256], index: 0, kind: input, shape index: {}]   ;;  %s705_s1 = inlined_call_operand.hbm [shape: bf16[256,128], index: 1, kind: input, shape index: {}]   ;;  %s706_s2 = inlined_call_operand.vmem [shape: f32[1,128], index: 2, kind: input, shape index: {}]   ;;  %s707_s3 = inlined_call_operand.hbm [shape: bf16[128,128], index: 3, kind: input, shape index: {}]   ;;  %s708_s4 = inlined_call_operand.vmem [shape: f32[1,128], index: 4, kind: input, shape index: {}]   ;;  %s709_s5 = inlined_call_operand.hbm [shape: f32[16,128], index: 5, kind: output, shape index: {}]  }
   0x1   :  { %11 = vsyncpa [#allocation6], 0 }
   0x2   :  { %12 = vsyncpa [#allocation4], 0  ;;  %s598_s18 = smov [#allocation5]   ;;  %s504_s22 = scalar_lea.hbm %s705_s1, 2048 }
   0x3   :  { %s30_s19 = sshll.u32 %s598_s18, 4  ;;  %p505_p0 = scmp.ne.s32.totalorder %s705_s1, %s504_s22  ;;  %s31_s19 = int_to_ptr.vmem [resolvable:$true] %s30_s19 }
   0x4   :  { %p508_p1 = scmp.lt.u32.totalorder %s504_s22, %s705_s1 }
   0x6   :  { %p510_p2 = pnand %p508_p1, %p505_p0 }
   0x8   :  { %513 = shalt.err (!%p510_p2)
}
   0x9   :  { %s514_s27 = scalar_lea.vmem %s31_s19, 2048  ;;  %p519_p4 = scmp.lt.s32.totalorder %s31_s19, %s31_s19 }
   0xa   :  { %p515_p3 = scmp.ne.s32.totalorder %s31_s19, %s514_s27  ;;  %p520_p5 = scmp.lt.s32.totalorder %s514_s27, %s514_s27 }
   0xc   :  { %p521_p6 = por %p520_p5, %p519_p4 }
   0xe   :  { %p522_p7 = pnand %p521_p6, %p515_p3 }
  0x10   :  { %525 = shalt.err (!%p522_p7)
}
  0x11   :  { %s599_s28 = smov 64   ;;  %s600_s29 = smov 4  }
  0x12   :  { %36 = dma.hbm_to_vmem [thread:$0]  %s705_s1, 2048, %s31_s19, [#allocation6], %s599_s28, %s599_s28, %s600_s29  }
  0x13   :  { %s601_s7 = smov [#allocation2]   ;;  %s526_s11 = scalar_lea.hbm %s704_s0, 256 }
  0x14   :  { %s18_s8 = sshll.u32 %s601_s7, 4  ;;  %p527_p8 = scmp.ne.s32.totalorder %s704_s0, %s526_s11  ;;  %s19_s8 = int_to_ptr.vmem [resolvable:$true] %s18_s8 }
  0x15   :  { %p530_p9 = scmp.lt.u32.totalorder %s526_s11, %s704_s0 }
  0x17   :  { %p532_p10 = pnand %p530_p9, %p527_p8 }
  0x19   :  { %535 = shalt.err (!%p532_p10)
}
  0x1a   :  { %s536_s16 = scalar_lea.vmem %s19_s8, 256  ;;  %p541_p12 = scmp.lt.s32.totalorder %s19_s8, %s19_s8 }
  0x1b   :  { %p537_p11 = scmp.ne.s32.totalorder %s19_s8, %s536_s16  ;;  %p542_p13 = scmp.lt.s32.totalorder %s536_s16, %s536_s16 }
  0x1d   :  { %p543_p0 = por %p542_p13, %p541_p12 }
  0x1f   :  { %p544_p1 = pnand %p543_p0, %p537_p11 }
  0x21   :  { %547 = shalt.err (!%p544_p1)
}
  0x22   :  { %s602_s1 = smov 128   ;;  %s603_s17 = smov 8  }
  0x23   :  { %24 = dma.hbm_to_vmem [thread:$0]  %s704_s0, 256, %s19_s8, [#allocation3], %s602_s1, %s602_s1, %s603_s17  }
  0x24   :  { %s604_s20 = smov [#allocation7]   ;;  %s548_s24 = scalar_lea.hbm %s707_s3, 1024 }
  0x25   :  { %s44_s21 = sshll.u32 %s604_s20, 4  ;;  %p549_p2 = scmp.ne.s32.totalorder %s707_s3, %s548_s24  ;;  %s45_s21 = int_to_ptr.vmem [resolvable:$true] %s44_s21 }
  0x26   :  { %p552_p3 = scmp.lt.u32.totalorder %s548_s24, %s707_s3 }
  0x28   :  { %p554_p4 = pnand %p552_p3, %p549_p2 }
  0x2a   :  { %557 = shalt.err (!%p554_p4)
}
  0x2b   :  { %s558_s6 = scalar_lea.vmem %s45_s21, 1024  ;;  %p563_p6 = scmp.lt.s32.totalorder %s45_s21, %s45_s21 }
  0x2c   :  { %p559_p5 = scmp.ne.s32.totalorder %s45_s21, %s558_s6  ;;  %p564_p7 = scmp.lt.s32.totalorder %s558_s6, %s558_s6 }
  0x2e   :  { %p565_p8 = por %p564_p7, %p563_p6 }
  0x30   :  { %p566_p9 = pnand %p565_p8, %p559_p5 }
  0x32   :  { %569 = shalt.err (!%p566_p9)
}
  0x33   :  { %50 = dma.hbm_to_vmem [thread:$0]  %s707_s3, 1024, %s45_s21, [#allocation6], %s599_s28, %s599_s28, %s600_s29  }
  0x34   :  { %592 = dma.done.wait [#allocation3], 256  }
  0x35   :  { %593 = vsyncadd [#allocation3], 4294967040 }
  0x36   :  { %594 = dma.done.wait [#allocation6], 3072  }
  0x37   :  { %595 = vsyncadd [#allocation6], 4294964224  ;;  %v605_v0 = vmov 0.0   ;;  %v477_v1 = vld [vmem:[#allocation5 + $0x40] sm:$0xff]   ;;  %v479_v3 = vld [vmem:[#allocation5 + $0x48] sm:$0xff]   ;;  %vm606_vm0 = vmmov 0  }
  0x38   :  { %447 = vmatprep.subr.bf16.mxu1 %v605_v0  ;;  %v478_v2 = vld [vmem:[#allocation5] sm:$0xff]   ;;  %416 = vmatprep.subr.bf16.mxu0 %v477_v1  ;;  %v480_v4 = vld [vmem:[#allocation5 + $0x8] sm:$0xff]   ;;  %v481_v5 = vld [vmem:[#allocation5 + $0x50] sm:$0xff]  }
  0x39   :  { %417 = vmatpush3.bf16.msra.mxu0 %v478_v2  ;;  %v482_v6 = vld [vmem:[#allocation5 + $0x10] sm:$0xff]   ;;  %v483_v7 = vld [vmem:[#allocation5 + $0x58] sm:$0xff]   ;;  %v485_v9 = vld [vmem:[#allocation5 + $0x60] sm:$0xff]   ;;  %463 = vmatprep.mubr.msk.bf16.mxu1 %vm606_vm0, %v605_v0 }
  0x3a   :  { %418 = vmatprep.subr.bf16.mxu0 %v479_v3  ;;  %v484_v8 = vld [vmem:[#allocation5 + $0x18] sm:$0xff]   ;;  %v486_v10 = vld [vmem:[#allocation5 + $0x20] sm:$0xff]   ;;  %v487_v11 = vld [vmem:[#allocation5 + $0x68] sm:$0xff]  }
  0x3b   :  { %v488_v12 = vld [vmem:[#allocation5 + $0x28] sm:$0xff]   ;;  %v495_v13 = vld [vmem:[#allocation2 + $0x4] ss:$8 sps:$4 sm:$0xff]   ;;  %v496_v14 = vld [vmem:[#allocation7] sm:$0xff]  }
  0x3c   :  { %v489_v15 = vld [vmem:[#allocation5 + $0x70] sm:$0xff]   ;;  %242 = vmatprep.mubr.bf16.mxu0 %v495_v13  ;;  %448 = vmatpush3.bf16.msra.mxu1 %v496_v14  ;;  %v497_v16 = vld [vmem:[#allocation7 + $0x8] sm:$0xff]   ;;  %v491_v18 = vld [vmem:[#allocation5 + $0x78] sm:$0xff]  }
  0x3d   :  { %419 = vmatpush3.bf16.msra.mxu0 %v480_v4  ;;  %449 = vmatprep.subr.bf16.mxu1 %v605_v0  ;;  %v490_v17 = vld [vmem:[#allocation5 + $0x30] sm:$0xff]   ;;  %v492_v20 = vld [vmem:[#allocation5 + $0x38] sm:$0xff]   ;;  %v500_v23 = vld [vmem:[#allocation7 + $0x20] sm:$0xff]  }
  0x3e   :  { %420 = vmatprep.subr.bf16.mxu0 %v481_v5  ;;  %v498_v19 = vld [vmem:[#allocation7 + $0x10] sm:$0xff]   ;;  %v499_v21 = vld [vmem:[#allocation7 + $0x18] sm:$0xff]   ;;  %v501_v24 = vld [vmem:[#allocation7 + $0x28] sm:$0xff]  }
  0x3f   :  { %v493_v22 = vld [vmem:[#allocation2] ss:$8 sps:$4 sm:$0xff]  }
  0x40   :  { %450 = vmatpush3.bf16.msra.mxu1 %v497_v16  ;;  %v502_v25 = vld [vmem:[#allocation7 + $0x30] sm:$0xff]   ;;  %v503_v26 = vld [vmem:[#allocation7 + $0x38] sm:$0xff]  }
  0x41   :  { %421 = vmatpush3.bf16.msra.mxu0 %v482_v6  ;;  %451 = vmatprep.subr.bf16.mxu1 %v605_v0  ;;  %v388_v28 = vld [vmem:[%s706_s2] ss:$0 sm:$0xff]  ;;  %s607_s2 = smov [#allocation8]  }
  0x42   :  { %422 = vmatprep.subr.bf16.mxu0 %v483_v7  ;;  %v407_v39 = vld [vmem:[%s708_s4] ss:$0 sm:$0xff]  ;;  %s375_s9 = sshll.u32 %s607_s2, 4  ;;  %s376_s9 = int_to_ptr.vmem [resolvable:$true] %s375_s9 }
  0x43   :  { %s570_s10 = scalar_lea.vmem %s376_s9, 256  ;;  %p575_p11 = scmp.lt.s32.totalorder %s376_s9, %s376_s9 }
  0x44   :  { %452 = vmatpush3.bf16.msra.mxu1 %v498_v19  ;;  %p571_p10 = scmp.ne.s32.totalorder %s376_s9, %s570_s10  ;;  %p576_p12 = scmp.lt.s32.totalorder %s570_s10, %s570_s10 }
  0x45   :  { %423 = vmatpush3.bf16.msra.mxu0 %v484_v8  ;;  %453 = vmatprep.subr.bf16.mxu1 %v605_v0 }
  0x46   :  { %424 = vmatprep.subr.bf16.mxu0 %v485_v9  ;;  %p577_p13 = por %p576_p12, %p575_p11 }
  0x48   :  { %454 = vmatpush3.bf16.msra.mxu1 %v499_v21  ;;  %p578_p0 = pnand %p577_p13, %p571_p10 }
  0x49   :  { %425 = vmatpush3.bf16.msra.mxu0 %v486_v10  ;;  %455 = vmatprep.subr.bf16.mxu1 %v605_v0 }
  0x4a   :  { %426 = vmatprep.subr.bf16.mxu0 %v487_v11 }
  0x4c   :  { %456 = vmatpush3.bf16.msra.mxu1 %v500_v23 }
  0x4d   :  { %427 = vmatpush3.bf16.msra.mxu0 %v488_v12  ;;  %457 = vmatprep.subr.bf16.mxu1 %v605_v0 }
  0x4e   :  { %428 = vmatprep.subr.bf16.mxu0 %v489_v15 }
  0x50   :  { %458 = vmatpush3.bf16.msra.mxu1 %v501_v24 }
  0x51   :  { %429 = vmatpush3.bf16.msra.mxu0 %v490_v17  ;;  %459 = vmatprep.subr.bf16.mxu1 %v605_v0 }
  0x52   :  { %430 = vmatprep.subr.bf16.mxu0 %v491_v18 }
  0x54   :  { %460 = vmatpush3.bf16.msra.mxu1 %v502_v25 }
  0x55   :  { %431 = vmatpush3.bf16.msra.mxu0 %v492_v20  ;;  %461 = vmatprep.subr.bf16.mxu1 %v605_v0 }
  0x58   :  { %243 = vmatmul.mubr.bf16.vlgmr.msra.gmra.mrb[0].mxu0 %v493_v22  ;;  %462 = vmatpush3.bf16.msra.mxu1 %v503_v26 }
 0x12b   :  { %v432_v27 = vpop.f32.mrb[0].mxu0 }
 0x12c   :  { %v433_v29 = vpop.f32.mrb[1].mxu0 }
 0x12d   :  { %v434_v30 = vadd.f32 %v433_v29, %v432_v27  ;;  %v435_v31 = vpop.f32.mrb[2].mxu0 }
 0x12e   :  { %v436_v32 = vpop.f32.mrb[3].mxu0 }
 0x12f   :  { %v245_v33 = vadd.f32 %v434_v30, %v388_v28  ;;  %v437_v34 = vadd.f32 %v436_v32, %v435_v31 }
 0x131   :  { %v248_v35 = vadd.f32 %v437_v34, %v388_v28  ;;  %v251_v36 = vmax.f32 %v245_v33, 0.0 }
 0x133   :  { %v252_v37 = vmax.f32 %v248_v35, 0.0 }
 0x135   :  { %v253_v38 = vpack.c.bf16 %v252_v37, %v251_v36 }
 0x137   :  { %464 = vmatmul.mubr.bf16.vlgmr.msra.gmra.mrb[0].mxu1 %v253_v38 }
 0x20a   :  { %v359_v40 = vpop.f32.mrb[0].mxu1 }
 0x20b   :  { %v360_v41 = vadd.f32 %v407_v39, %v359_v40  ;;  %v465_v42 = vpop.f32.mrb[1].mxu1 }
 0x20c   :  { %v362_v43 = vpop.f32.mrb[2].mxu1 }
 0x20d   :  { %v366_v44 = vmax.f32 %v360_v41, 0.0  ;;  %v363_v45 = vadd.f32 %v407_v39, %v362_v43  ;;  %v466_v46 = vpop.f32.mrb[3].mxu1 }
 0x20f   :  { %368 = vst [vmem:[#allocation8] sm:$0xff] %v366_v44  ;;  %v367_v47 = vmax.f32 %v363_v45, 0.0 }
 0x211   :  { %369 = vst [vmem:[#allocation8 + $0x8] sm:$0xff] %v367_v47 }
 0x212   :  { %581 = shalt.err (!%p578_p0)
}
 0x213   :  { %s582_s12 = scalar_lea.hbm %s709_s5, 256 }
 0x214   :  { %p583_p1 = scmp.ne.s32.totalorder %s709_s5, %s582_s12  ;;  %p586_p2 = scmp.lt.u32.totalorder %s582_s12, %s709_s5 }
 0x216   :  { %p588_p3 = pnand %p586_p2, %p583_p1 }
 0x218   :  { %591 = shalt.err (!%p588_p3)
}
 0x219   :  { %381 = dma.vmem_to_hbm [thread:$0]  %s376_s9, 256, %s709_s5, [#allocation4], %s602_s1, %s602_s1, %s603_s17  }
 0x21a   :  { %596 = dma.done.wait [#allocation4], 256  }
 0x21b   :  { %597 = vsyncadd [#allocation4], 4294967040 }
 0x21c   :  { %385 = vsyncpa [#allocation3], 1 }
 0x21d   :  { %386 = vsyncpa [#allocation6], 1 }
 0x21e   :  { %387 = vsyncpa [#allocation4], 1 }

</bundles_post_ra>
